<compile_context>
chip_gen: v6e
topology: v6e:2x2x1
jax: 0.10.0
libtpu: 0.0.40
codegen_flags: <defaults>
</compile_context>

<pallas_src>
import functools

import jax
import jax.numpy as jnp
from jax import lax
from jax.experimental import pallas as pl
from jax.experimental.pallas import tpu as pltpu

_LANES = 128


def _circle_loss_kernel(
    sp_ref, sn_ref, out_ref,
    m_p_ref, s_p_ref, m_n_ref, s_n_ref,
    *, m: float, gamma: float,
    rows_p: int, rows_n: int,
    n_p_blocks: int, n_n_blocks: int,
    half_p: int, half_n: int,
    tail_p: int, tail_n: int,
):
    c = pl.program_id(0)   # core-split index ("parallel")
    k = pl.program_id(1)   # streaming reduction step ("arbitrary")

    neg_inf = -jnp.inf
    one_plus_m = 1.0 + m
    delta_p = 1.0 - m
    delta_n = m
    neg_gamma = -gamma

    @pl.when(k == 0)
    def _init():
        m_p_ref[...] = jnp.full_like(m_p_ref, neg_inf)
        s_p_ref[...] = jnp.zeros_like(s_p_ref)
        m_n_ref[...] = jnp.full_like(m_n_ref, neg_inf)
        s_n_ref[...] = jnp.zeros_like(s_n_ref)

    def _mask_tail(logit, rows, n_valid):
        # Only traced for the (statically known) last partial block.
        row_idx = lax.broadcasted_iota(jnp.int32, (rows, _LANES), 0)
        lane_idx = lax.broadcasted_iota(jnp.int32, (rows, _LANES), 1)
        idx = row_idx * _LANES + lane_idx
        return jnp.where(idx < n_valid, logit, neg_inf)

    def _online_update(logit, rows, m_ref, s_ref):
        # (rows,128) -> (rows//8, 8, 128): pure vreg regrouping (free).
        logit3 = logit.reshape(rows // 8, 8, _LANES)
        chunk_max = jnp.max(logit3, axis=0)                     # (8,128) vreg-wise
        new_m = jnp.maximum(m_ref[...], chunk_max)
        # Slots that have seen no valid element have running max -inf; use 0
        # as the exponent base there so exp(-inf - 0) = 0 (no NaNs).
        m_safe = jnp.where(new_m == neg_inf, 0.0, new_m)
        alpha = jnp.exp(m_ref[...] - m_safe)
        chunk_sum = jnp.sum(jnp.exp(logit3 - m_safe), axis=0)   # (8,128)
        s_ref[...] = s_ref[...] * alpha + chunk_sum
        m_ref[...] = new_m

    def _stream(x_ref, rows, half, n_blocks, tail, m_ref, s_ref, make_logit):
        blk = c * half + k
        is_last = blk == (n_blocks - 1)

        @pl.when(jnp.logical_and(k < half, blk < n_blocks))
        def _update():
            logit = make_logit(x_ref[...].astype(jnp.float32))   # (rows, 128)
            if tail:  # static: this stream has one partial last block
                @pl.when(is_last)
                def _masked():
                    _online_update(_mask_tail(logit, rows, tail), rows, m_ref, s_ref)

                @pl.when(jnp.logical_not(is_last))
                def _full():
                    _online_update(logit, rows, m_ref, s_ref)
            else:
                _online_update(logit, rows, m_ref, s_ref)

    def _logit_p(x):
        a = jnp.maximum(one_plus_m - x, 0.0)
        return (a * neg_gamma) * (x - delta_p)

    def _logit_n(x):
        a = jnp.maximum(x + m, 0.0)
        return (a * gamma) * (x - delta_n)

    _stream(sp_ref, rows_p, half_p, n_p_blocks, tail_p, m_p_ref, s_p_ref, _logit_p)
    _stream(sn_ref, rows_n, half_n, n_n_blocks, tail_n, m_n_ref, s_n_ref, _logit_n)

    @pl.when(k == pl.num_programs(1) - 1)
    def _finalize():
        out_ref[0, 0] = m_p_ref[...]
        out_ref[0, 1] = s_p_ref[...]
        out_ref[0, 2] = m_n_ref[...]
        out_ref[0, 3] = s_n_ref[...]


def _round_up(x: int, mult: int) -> int:
    return ((x + mult - 1) // mult) * mult


def _sublane_multiple(dtype) -> int:
    # Packed-dtype sublane granularity: (8,128) f32, (16,128) bf16/f16, (32,128) 8-bit.
    return {4: 8, 2: 16, 1: 32}.get(jnp.dtype(dtype).itemsize, 8)


def circle_loss(sp: jax.Array, sn: jax.Array, m: float, gamma: float,
                *, max_block_rows: int = 2048) -> jax.Array:
    """Pallas forward of CircleLoss(m, gamma)(sp, sn); returns a scalar f32."""
    sp = sp.reshape(-1)
    sn = sn.reshape(-1)
    n_p = int(sp.shape[0])
    n_n = int(sn.shape[0])

    def _plan(x, n):
        sub = _sublane_multiple(x.dtype)
        max_rows = max(sub, (int(max_block_rows) // sub) * sub)
        rows_needed = pl.cdiv(max(n, 1), _LANES)
        rows = min(max_rows, _round_up(rows_needed, sub))
        chunk = rows * _LANES
        n_blocks = max(1, pl.cdiv(n, chunk))
        tail = (n - (n_blocks - 1) * chunk) if (n % chunk != 0) else 0
        padded = n_blocks * chunk
        if padded != n:                      # skip the pad copy when not needed
            x = jnp.pad(x, (0, padded - n))
        x = x.reshape(n_blocks * rows, _LANES)   # keep input dtype (no upcast)
        return x, int(rows), int(n_blocks), int(tail)

    sp2, rows_p, n_p_blocks, tail_p = _plan(sp, n_p)
    sn2, rows_n, n_n_blocks, tail_n = _plan(sn, n_n)

    # Split each stream's block range in half across a leading "parallel" axis
    # (uses both TensorCores on v7x; harmless sequential halves elsewhere).
    split = 2 if max(n_p_blocks, n_n_blocks) > 1 else 1
    half_p = pl.cdiv(n_p_blocks, split)
    half_n = pl.cdiv(n_n_blocks, split)
    k_steps = max(half_p, half_n)

    kernel = functools.partial(
        _circle_loss_kernel,
        m=float(m), gamma=float(gamma),
        rows_p=rows_p, rows_n=rows_n,
        n_p_blocks=n_p_blocks, n_n_blocks=n_n_blocks,
        half_p=int(half_p), half_n=int(half_n),
        tail_p=tail_p, tail_n=tail_n,
    )

    # Clamped index maps: once a core runs past its stream's last block the
    # block index stops changing, so Pallas stops re-DMAing dead blocks.
    sp_index_map = lambda c, k: (jnp.minimum(c * half_p + k, n_p_blocks - 1), 0)
    sn_index_map = lambda c, k: (jnp.minimum(c * half_n + k, n_n_blocks - 1), 0)

    parts = pl.pallas_call(
        kernel,
        out_shape=jax.ShapeDtypeStruct((split, 4, 8, _LANES), jnp.float32),
        grid_spec=pltpu.PrefetchScalarGridSpec(
            num_scalar_prefetch=0,
            grid=(split, int(k_steps)),
            in_specs=[
                pl.BlockSpec((rows_p, _LANES), sp_index_map),
                pl.BlockSpec((rows_n, _LANES), sn_index_map),
            ],
            out_specs=pl.BlockSpec((1, 4, 8, _LANES), lambda c, k: (c, 0, 0, 0)),
            scratch_shapes=[
                pltpu.VMEM((8, _LANES), jnp.float32),  # running max, positives
                pltpu.VMEM((8, _LANES), jnp.float32),  # running sumexp, positives
                pltpu.VMEM((8, _LANES), jnp.float32),  # running max, negatives
                pltpu.VMEM((8, _LANES), jnp.float32),  # running sumexp, negatives
            ],
        ),
        compiler_params=pltpu.CompilerParams(
            dimension_semantics=("parallel", "arbitrary"),
            vmem_limit_bytes=32 * 1024 * 1024,
        ),
    )(sp2, sn2)

    # Tiny JAX epilogue: combine per-core (max, sumexp) partials -> logsumexp,
    # then a numerically stable softplus.
    def _lse(mm, ss):
        big = jnp.max(mm)
        big_safe = jnp.where(big == -jnp.inf, 0.0, big)
        total = jnp.sum(ss * jnp.exp(mm - big_safe))
        return big + jnp.log(total)

    z = _lse(parts[:, 2], parts[:, 3]) + _lse(parts[:, 0], parts[:, 1])
    return jnp.maximum(z, 0.0) + jnp.log1p(jnp.exp(-jnp.abs(z)))


def _circle_loss_ref(sp, sn, m, gamma):
    sp = sp.astype(jnp.float32)
    sn = sn.astype(jnp.float32)
    ap = jnp.clip(-sp + 1.0 + m, 0.0, None)
    an = jnp.clip(sn + m, 0.0, None)
    logit_p = -ap * (sp - (1.0 - m)) * gamma
    logit_n = an * (sn - m) * gamma
    z = (jax.scipy.special.logsumexp(logit_n, axis=0)
         + jax.scipy.special.logsumexp(logit_p, axis=0))
    return jax.nn.softplus(z)


if __name__ == "__main__":
    m, gamma = 0.25, 64.0
    key = jax.random.PRNGKey(0)
    kp1, kn1, kp2, kn2, kp3, kn3 = jax.random.split(key, 6)

    # Case 1: small sizes, single block per stream (split == 1).
    sp1 = jax.random.uniform(kp1, (128,), minval=-1.0, maxval=1.0, dtype=jnp.float32)
    sn1 = jax.random.uniform(kn1, (256,), minval=-1.0, maxval=1.0, dtype=jnp.float32)
    loss1 = circle_loss(sp1, sn1, m, gamma)
    jax.block_until_ready(loss1)
    ref1 = _circle_loss_ref(sp1, sn1, m, gamma)
    assert jnp.allclose(loss1, ref1, rtol=1e-4, atol=1e-4), (loss1, ref1)

    # Case 2: ragged, unequal sizes with a small block height to force the
    # multi-chunk online-logsumexp path, per-stream tails and the 2-way split.
    sp2 = jax.random.uniform(kp2, (1500,), minval=-1.0, maxval=1.0, dtype=jnp.float32)
    sn2 = jax.random.uniform(kn2, (2300,), minval=-1.0, maxval=1.0, dtype=jnp.float32)
    loss2 = circle_loss(sp2, sn2, m, gamma, max_block_rows=8)
    jax.block_until_ready(loss2)
    ref2 = _circle_loss_ref(sp2, sn2, m, gamma)
    assert jnp.allclose(loss2, ref2, rtol=1e-4, atol=1e-4), (loss2, ref2)

    # Case 3: bf16 inputs (dtype-aware sublane rounding, no wrapper upcast).
    sp3 = jax.random.uniform(kp3, (700,), minval=-1.0, maxval=1.0).astype(jnp.bfloat16)
    sn3 = jax.random.uniform(kn3, (3000,), minval=-1.0, maxval=1.0).astype(jnp.bfloat16)
    loss3 = circle_loss(sp3, sn3, m, gamma, max_block_rows=16)
    jax.block_until_ready(loss3)
    ref3 = _circle_loss_ref(sp3, sn3, m, gamma)
    assert jnp.allclose(loss3, ref3, rtol=1e-4, atol=1e-4), (loss3, ref3)

    print("KERNEL_OK")
</pallas_src>

<mosaic_0001>
module attributes {stable_mosaic.version = 11 : i64} {
  func.func @_circle_loss_kernel(%arg0: i32, %arg1: i32, %arg2: memref<8x128xf32, #tpu.memory_space<vmem>>, %arg3: memref<8x128xf32, #tpu.memory_space<vmem>>, %arg4: memref<1x4x8x128xf32, #tpu.memory_space<vmem>>, %arg5: memref<8x128xf32, #tpu.memory_space<vmem>>, %arg6: memref<8x128xf32, #tpu.memory_space<vmem>>, %arg7: memref<8x128xf32, #tpu.memory_space<vmem>>, %arg8: memref<8x128xf32, #tpu.memory_space<vmem>>) attributes {dimension_semantics = [#tpu.dimension_semantics<parallel>, #tpu.dimension_semantics<arbitrary>], iteration_bounds = array<i64: 1, 1>, scalar_prefetch = 0 : i64, scratch_operands = 4 : i64, tpu.core_type = #tpu.core_type<tc>, window_params = [{transform_indices = @transform_0, window_bounds = array<i64: 8, 128>}, {transform_indices = @transform_1, window_bounds = array<i64: 8, 128>}, {transform_indices = @transform_2, window_bounds = array<i64: 1, 4, 8, 128>}]} {
    %c0_i32 = arith.constant 0 : i32
    %0 = arith.cmpi eq, %arg1, %c0_i32 : i32
    %1 = arith.extui %0 : i1 to i32
    %c0_i32_0 = arith.constant 0 : i32
    %2 = arith.cmpi ne, %1, %c0_i32_0 : i32
    scf.if %2 {
      %cst = arith.constant 0xFF800000 : f32
      %22 = vector.broadcast %cst : f32 to vector<8x128xf32>
      %c0 = arith.constant 0 : index
      %c0_12 = arith.constant 0 : index
      %23 = vector.load %arg5[%c0, %c0_12] : memref<8x128xf32, #tpu.memory_space<vmem>>, vector<8x128xf32>
      tpu.vector_store %arg5[%c0, %c0_12], %22 {strides = array<i32>} : memref<8x128xf32, #tpu.memory_space<vmem>>, vector<8x128xf32>,
      %cst_13 = arith.constant 0.000000e+00 : f32
      %24 = vector.broadcast %cst_13 : f32 to vector<8x128xf32>
      %c0_14 = arith.constant 0 : index
      %c0_15 = arith.constant 0 : index
      %25 = vector.load %arg6[%c0_14, %c0_15] : memref<8x128xf32, #tpu.memory_space<vmem>>, vector<8x128xf32>
      tpu.vector_store %arg6[%c0_14, %c0_15], %24 {strides = array<i32>} : memref<8x128xf32, #tpu.memory_space<vmem>>, vector<8x128xf32>,
      %cst_16 = arith.constant 0xFF800000 : f32
      %26 = vector.broadcast %cst_16 : f32 to vector<8x128xf32>
      %c0_17 = arith.constant 0 : index
      %c0_18 = arith.constant 0 : index
      %27 = vector.load %arg7[%c0_17, %c0_18] : memref<8x128xf32, #tpu.memory_space<vmem>>, vector<8x128xf32>
      tpu.vector_store %arg7[%c0_17, %c0_18], %26 {strides = array<i32>} : memref<8x128xf32, #tpu.memory_space<vmem>>, vector<8x128xf32>,
      %cst_19 = arith.constant 0.000000e+00 : f32
      %28 = vector.broadcast %cst_19 : f32 to vector<8x128xf32>
      %c0_20 = arith.constant 0 : index
      %c0_21 = arith.constant 0 : index
      %29 = vector.load %arg8[%c0_20, %c0_21] : memref<8x128xf32, #tpu.memory_space<vmem>>, vector<8x128xf32>
      tpu.vector_store %arg8[%c0_20, %c0_21], %28 {strides = array<i32>} : memref<8x128xf32, #tpu.memory_space<vmem>>, vector<8x128xf32>,
    } else {
    }
    %c1_i32 = arith.constant 1 : i32
    %3 = arith.muli %arg0, %c1_i32 : i32
    %4 = arith.addi %3, %arg1 : i32
    %c0_i32_1 = arith.constant 0 : i32
    %5 = arith.cmpi eq, %4, %c0_i32_1 : i32
    %c1_i32_2 = arith.constant 1 : i32
    %6 = arith.cmpi slt, %arg1, %c1_i32_2 : i32
    %c1_i32_3 = arith.constant 1 : i32
    %7 = arith.cmpi slt, %4, %c1_i32_3 : i32
    %8 = arith.andi %6, %7 : i1
    %9 = arith.extui %8 : i1 to i32
    %c0_i32_4 = arith.constant 0 : i32
    %10 = arith.cmpi ne, %9, %c0_i32_4 : i32
    scf.if %10 {
      %c0 = arith.constant 0 : index
      %c0_12 = arith.constant 0 : index
      %22 = vector.load %arg2[%c0, %c0_12] : memref<8x128xf32, #tpu.memory_space<vmem>>, vector<8x128xf32>
      %cst = arith.constant 1.250000e+00 : f32
      %23 = vector.broadcast %cst : f32 to vector<8x128xf32>
      %24 = arith.subf %23, %22 : vector<8x128xf32>
      %cst_13 = arith.constant 0.000000e+00 : f32
      %25 = vector.broadcast %cst_13 : f32 to vector<8x128xf32>
      %26 = arith.maximumf %24, %25 : vector<8x128xf32>
      %cst_14 = arith.constant -6.400000e+01 : f32
      %27 = vector.broadcast %cst_14 : f32 to vector<8x128xf32>
      %28 = arith.mulf %26, %27 : vector<8x128xf32>
      %cst_15 = arith.constant 7.500000e-01 : f32
      %29 = vector.broadcast %cst_15 : f32 to vector<8x128xf32>
      %30 = arith.subf %22, %29 : vector<8x128xf32>
      %31 = arith.mulf %28, %30 : vector<8x128xf32>
      %32 = arith.extui %5 : i1 to i32
      %c0_i32_16 = arith.constant 0 : i32
      %33 = arith.cmpi ne, %32, %c0_i32_16 : i32
      scf.if %33 {
        %37 = tpu.iota {dimensions = array<i32: 0>} : vector<8x128xi32>
        %38 = tpu.iota {dimensions = array<i32: 1>} : vector<8x128xi32>
        %c128_i32 = arith.constant 128 : i32
        %39 = vector.broadcast %c128_i32 : i32 to vector<8x128xi32>
        %40 = arith.muli %37, %39 : vector<8x128xi32>
        %41 = arith.addi %40, %38 : vector<8x128xi32>
        %c128_i32_18 = arith.constant 128 : i32
        %42 = vector.broadcast %c128_i32_18 : i32 to vector<8x128xi32>
        %43 = arith.cmpi slt, %41, %42 : vector<8x128xi32>
        %cst_19 = arith.constant 0xFF800000 : f32
        %44 = vector.broadcast %cst_19 : f32 to vector<8x128xf32>
        %45 = arith.select %43, %31, %44 : vector<8x128xi1>, vector<8x128xf32>
        %46 = vector.shape_cast %45 : vector<8x128xf32> to vector<1x8x128xf32>
        %cst_20 = arith.constant dense<0xFF800000> : vector<8x128xf32>
        %47 = vector.multi_reduction <maximumf>, %46, %cst_20 [0] : vector<1x8x128xf32> to vector<8x128xf32>
        %c0_21 = arith.constant 0 : index
        %c0_22 = arith.constant 0 : index
        %48 = vector.load %arg5[%c0_21, %c0_22] : memref<8x128xf32, #tpu.memory_space<vmem>>, vector<8x128xf32>
        %49 = arith.maximumf %48, %47 : vector<8x128xf32>
        %cst_23 = arith.constant 0xFF800000 : f32
        %50 = vector.broadcast %cst_23 : f32 to vector<8x128xf32>
        %51 = arith.cmpf oeq, %49, %50 : vector<8x128xf32>
        %cst_24 = arith.constant 0.000000e+00 : f32
        %52 = vector.broadcast %cst_24 : f32 to vector<8x128xf32>
        %53 = arith.select %51, %52, %49 : vector<8x128xi1>, vector<8x128xf32>
        %c0_25 = arith.constant 0 : index
        %c0_26 = arith.constant 0 : index
        %54 = vector.load %arg5[%c0_25, %c0_26] : memref<8x128xf32, #tpu.memory_space<vmem>>, vector<8x128xf32>
        %55 = arith.subf %54, %53 : vector<8x128xf32>
        %56 = math.exp %55 : vector<8x128xf32>
        %57 = vector.shape_cast %53 : vector<8x128xf32> to vector<1x8x128xf32>
        %58 = arith.subf %46, %57 : vector<1x8x128xf32>
        %59 = math.exp %58 : vector<1x8x128xf32>
        %cst_27 = arith.constant dense<0.000000e+00> : vector<8x128xf32>
        %60 = vector.multi_reduction <add>, %59, %cst_27 [0] : vector<1x8x128xf32> to vector<8x128xf32>
        %c0_28 = arith.constant 0 : index
        %c0_29 = arith.constant 0 : index
        %61 = vector.load %arg6[%c0_28, %c0_29] : memref<8x128xf32, #tpu.memory_space<vmem>>, vector<8x128xf32>
        %62 = arith.mulf %61, %56 : vector<8x128xf32>
        %63 = arith.addf %62, %60 : vector<8x128xf32>
        %c0_30 = arith.constant 0 : index
        %c0_31 = arith.constant 0 : index
        %64 = vector.load %arg6[%c0_30, %c0_31] : memref<8x128xf32, #tpu.memory_space<vmem>>, vector<8x128xf32>
        tpu.vector_store %arg6[%c0_30, %c0_31], %63 {strides = array<i32>} : memref<8x128xf32, #tpu.memory_space<vmem>>, vector<8x128xf32>,
        %c0_32 = arith.constant 0 : index
        %c0_33 = arith.constant 0 : index
        %65 = vector.load %arg5[%c0_32, %c0_33] : memref<8x128xf32, #tpu.memory_space<vmem>>, vector<8x128xf32>
        tpu.vector_store %arg5[%c0_32, %c0_33], %49 {strides = array<i32>} : memref<8x128xf32, #tpu.memory_space<vmem>>, vector<8x128xf32>,
      } else {
      }
      %true = arith.constant true
      %34 = arith.xori %5, %true : i1
      %35 = arith.extui %34 : i1 to i32
      %c0_i32_17 = arith.constant 0 : i32
      %36 = arith.cmpi ne, %35, %c0_i32_17 : i32
      scf.if %36 {
        %37 = vector.shape_cast %31 : vector<8x128xf32> to vector<1x8x128xf32>
        %cst_18 = arith.constant dense<0xFF800000> : vector<8x128xf32>
        %38 = vector.multi_reduction <maximumf>, %37, %cst_18 [0] : vector<1x8x128xf32> to vector<8x128xf32>
        %c0_19 = arith.constant 0 : index
        %c0_20 = arith.constant 0 : index
        %39 = vector.load %arg5[%c0_19, %c0_20] : memref<8x128xf32, #tpu.memory_space<vmem>>, vector<8x128xf32>
        %40 = arith.maximumf %39, %38 : vector<8x128xf32>
        %cst_21 = arith.constant 0xFF800000 : f32
        %41 = vector.broadcast %cst_21 : f32 to vector<8x128xf32>
        %42 = arith.cmpf oeq, %40, %41 : vector<8x128xf32>
        %cst_22 = arith.constant 0.000000e+00 : f32
        %43 = vector.broadcast %cst_22 : f32 to vector<8x128xf32>
        %44 = arith.select %42, %43, %40 : vector<8x128xi1>, vector<8x128xf32>
        %c0_23 = arith.constant 0 : index
        %c0_24 = arith.constant 0 : index
        %45 = vector.load %arg5[%c0_23, %c0_24] : memref<8x128xf32, #tpu.memory_space<vmem>>, vector<8x128xf32>
        %46 = arith.subf %45, %44 : vector<8x128xf32>
        %47 = math.exp %46 : vector<8x128xf32>
        %48 = vector.shape_cast %44 : vector<8x128xf32> to vector<1x8x128xf32>
        %49 = arith.subf %37, %48 : vector<1x8x128xf32>
        %50 = math.exp %49 : vector<1x8x128xf32>
        %cst_25 = arith.constant dense<0.000000e+00> : vector<8x128xf32>
        %51 = vector.multi_reduction <add>, %50, %cst_25 [0] : vector<1x8x128xf32> to vector<8x128xf32>
        %c0_26 = arith.constant 0 : index
        %c0_27 = arith.constant 0 : index
        %52 = vector.load %arg6[%c0_26, %c0_27] : memref<8x128xf32, #tpu.memory_space<vmem>>, vector<8x128xf32>
        %53 = arith.mulf %52, %47 : vector<8x128xf32>
        %54 = arith.addf %53, %51 : vector<8x128xf32>
        %c0_28 = arith.constant 0 : index
        %c0_29 = arith.constant 0 : index
        %55 = vector.load %arg6[%c0_28, %c0_29] : memref<8x128xf32, #tpu.memory_space<vmem>>, vector<8x128xf32>
        tpu.vector_store %arg6[%c0_28, %c0_29], %54 {strides = array<i32>} : memref<8x128xf32, #tpu.memory_space<vmem>>, vector<8x128xf32>,
        %c0_30 = arith.constant 0 : index
        %c0_31 = arith.constant 0 : index
        %56 = vector.load %arg5[%c0_30, %c0_31] : memref<8x128xf32, #tpu.memory_space<vmem>>, vector<8x128xf32>
        tpu.vector_store %arg5[%c0_30, %c0_31], %40 {strides = array<i32>} : memref<8x128xf32, #tpu.memory_space<vmem>>, vector<8x128xf32>,
      } else {
      }
    } else {
    }
    %c1_i32_5 = arith.constant 1 : i32
    %11 = arith.muli %arg0, %c1_i32_5 : i32
    %12 = arith.addi %11, %arg1 : i32
    %c0_i32_6 = arith.constant 0 : i32
    %13 = arith.cmpi eq, %12, %c0_i32_6 : i32
    %c1_i32_7 = arith.constant 1 : i32
    %14 = arith.cmpi slt, %arg1, %c1_i32_7 : i32
    %c1_i32_8 = arith.constant 1 : i32
    %15 = arith.cmpi slt, %12, %c1_i32_8 : i32
    %16 = arith.andi %14, %15 : i1
    %17 = arith.extui %16 : i1 to i32
    %c0_i32_9 = arith.constant 0 : i32
    %18 = arith.cmpi ne, %17, %c0_i32_9 : i32
    scf.if %18 {
      %c0 = arith.constant 0 : index
      %c0_12 = arith.constant 0 : index
      %22 = vector.load %arg3[%c0, %c0_12] : memref<8x128xf32, #tpu.memory_space<vmem>>, vector<8x128xf32>
      %cst = arith.constant 2.500000e-01 : f32
      %23 = vector.broadcast %cst : f32 to vector<8x128xf32>
      %24 = arith.addf %22, %23 : vector<8x128xf32>
      %cst_13 = arith.constant 0.000000e+00 : f32
      %25 = vector.broadcast %cst_13 : f32 to vector<8x128xf32>
      %26 = arith.maximumf %24, %25 : vector<8x128xf32>
      %cst_14 = arith.constant 6.400000e+01 : f32
      %27 = vector.broadcast %cst_14 : f32 to vector<8x128xf32>
      %28 = arith.mulf %26, %27 : vector<8x128xf32>
      %cst_15 = arith.constant 2.500000e-01 : f32
      %29 = vector.broadcast %cst_15 : f32 to vector<8x128xf32>
      %30 = arith.subf %22, %29 : vector<8x128xf32>
      %31 = arith.mulf %28, %30 : vector<8x128xf32>
      %32 = arith.extui %13 : i1 to i32
      %c0_i32_16 = arith.constant 0 : i32
      %33 = arith.cmpi ne, %32, %c0_i32_16 : i32
      scf.if %33 {
        %37 = tpu.iota {dimensions = array<i32: 0>} : vector<8x128xi32>
        %38 = tpu.iota {dimensions = array<i32: 1>} : vector<8x128xi32>
        %c128_i32 = arith.constant 128 : i32
        %39 = vector.broadcast %c128_i32 : i32 to vector<8x128xi32>
        %40 = arith.muli %37, %39 : vector<8x128xi32>
        %41 = arith.addi %40, %38 : vector<8x128xi32>
        %c256_i32 = arith.constant 256 : i32
        %42 = vector.broadcast %c256_i32 : i32 to vector<8x128xi32>
        %43 = arith.cmpi slt, %41, %42 : vector<8x128xi32>
        %cst_18 = arith.constant 0xFF800000 : f32
        %44 = vector.broadcast %cst_18 : f32 to vector<8x128xf32>
        %45 = arith.select %43, %31, %44 : vector<8x128xi1>, vector<8x128xf32>
        %46 = vector.shape_cast %45 : vector<8x128xf32> to vector<1x8x128xf32>
        %cst_19 = arith.constant dense<0xFF800000> : vector<8x128xf32>
        %47 = vector.multi_reduction <maximumf>, %46, %cst_19 [0] : vector<1x8x128xf32> to vector<8x128xf32>
        %c0_20 = arith.constant 0 : index
        %c0_21 = arith.constant 0 : index
        %48 = vector.load %arg7[%c0_20, %c0_21] : memref<8x128xf32, #tpu.memory_space<vmem>>, vector<8x128xf32>
        %49 = arith.maximumf %48, %47 : vector<8x128xf32>
        %cst_22 = arith.constant 0xFF800000 : f32
        %50 = vector.broadcast %cst_22 : f32 to vector<8x128xf32>
        %51 = arith.cmpf oeq, %49, %50 : vector<8x128xf32>
        %cst_23 = arith.constant 0.000000e+00 : f32
        %52 = vector.broadcast %cst_23 : f32 to vector<8x128xf32>
        %53 = arith.select %51, %52, %49 : vector<8x128xi1>, vector<8x128xf32>
        %c0_24 = arith.constant 0 : index
        %c0_25 = arith.constant 0 : index
        %54 = vector.load %arg7[%c0_24, %c0_25] : memref<8x128xf32, #tpu.memory_space<vmem>>, vector<8x128xf32>
        %55 = arith.subf %54, %53 : vector<8x128xf32>
        %56 = math.exp %55 : vector<8x128xf32>
        %57 = vector.shape_cast %53 : vector<8x128xf32> to vector<1x8x128xf32>
        %58 = arith.subf %46, %57 : vector<1x8x128xf32>
        %59 = math.exp %58 : vector<1x8x128xf32>
        %cst_26 = arith.constant dense<0.000000e+00> : vector<8x128xf32>
        %60 = vector.multi_reduction <add>, %59, %cst_26 [0] : vector<1x8x128xf32> to vector<8x128xf32>
        %c0_27 = arith.constant 0 : index
        %c0_28 = arith.constant 0 : index
        %61 = vector.load %arg8[%c0_27, %c0_28] : memref<8x128xf32, #tpu.memory_space<vmem>>, vector<8x128xf32>
        %62 = arith.mulf %61, %56 : vector<8x128xf32>
        %63 = arith.addf %62, %60 : vector<8x128xf32>
        %c0_29 = arith.constant 0 : index
        %c0_30 = arith.constant 0 : index
        %64 = vector.load %arg8[%c0_29, %c0_30] : memref<8x128xf32, #tpu.memory_space<vmem>>, vector<8x128xf32>
        tpu.vector_store %arg8[%c0_29, %c0_30], %63 {strides = array<i32>} : memref<8x128xf32, #tpu.memory_space<vmem>>, vector<8x128xf32>,
        %c0_31 = arith.constant 0 : index
        %c0_32 = arith.constant 0 : index
        %65 = vector.load %arg7[%c0_31, %c0_32] : memref<8x128xf32, #tpu.memory_space<vmem>>, vector<8x128xf32>
        tpu.vector_store %arg7[%c0_31, %c0_32], %49 {strides = array<i32>} : memref<8x128xf32, #tpu.memory_space<vmem>>, vector<8x128xf32>,
      } else {
      }
      %true = arith.constant true
      %34 = arith.xori %13, %true : i1
      %35 = arith.extui %34 : i1 to i32
      %c0_i32_17 = arith.constant 0 : i32
      %36 = arith.cmpi ne, %35, %c0_i32_17 : i32
      scf.if %36 {
        %37 = vector.shape_cast %31 : vector<8x128xf32> to vector<1x8x128xf32>
        %cst_18 = arith.constant dense<0xFF800000> : vector<8x128xf32>
        %38 = vector.multi_reduction <maximumf>, %37, %cst_18 [0] : vector<1x8x128xf32> to vector<8x128xf32>
        %c0_19 = arith.constant 0 : index
        %c0_20 = arith.constant 0 : index
        %39 = vector.load %arg7[%c0_19, %c0_20] : memref<8x128xf32, #tpu.memory_space<vmem>>, vector<8x128xf32>
        %40 = arith.maximumf %39, %38 : vector<8x128xf32>
        %cst_21 = arith.constant 0xFF800000 : f32
        %41 = vector.broadcast %cst_21 : f32 to vector<8x128xf32>
        %42 = arith.cmpf oeq, %40, %41 : vector<8x128xf32>
        %cst_22 = arith.constant 0.000000e+00 : f32
        %43 = vector.broadcast %cst_22 : f32 to vector<8x128xf32>
        %44 = arith.select %42, %43, %40 : vector<8x128xi1>, vector<8x128xf32>
        %c0_23 = arith.constant 0 : index
        %c0_24 = arith.constant 0 : index
        %45 = vector.load %arg7[%c0_23, %c0_24] : memref<8x128xf32, #tpu.memory_space<vmem>>, vector<8x128xf32>
        %46 = arith.subf %45, %44 : vector<8x128xf32>
        %47 = math.exp %46 : vector<8x128xf32>
        %48 = vector.shape_cast %44 : vector<8x128xf32> to vector<1x8x128xf32>
        %49 = arith.subf %37, %48 : vector<1x8x128xf32>
        %50 = math.exp %49 : vector<1x8x128xf32>
        %cst_25 = arith.constant dense<0.000000e+00> : vector<8x128xf32>
        %51 = vector.multi_reduction <add>, %50, %cst_25 [0] : vector<1x8x128xf32> to vector<8x128xf32>
        %c0_26 = arith.constant 0 : index
        %c0_27 = arith.constant 0 : index
        %52 = vector.load %arg8[%c0_26, %c0_27] : memref<8x128xf32, #tpu.memory_space<vmem>>, vector<8x128xf32>
        %53 = arith.mulf %52, %47 : vector<8x128xf32>
        %54 = arith.addf %53, %51 : vector<8x128xf32>
        %c0_28 = arith.constant 0 : index
        %c0_29 = arith.constant 0 : index
        %55 = vector.load %arg8[%c0_28, %c0_29] : memref<8x128xf32, #tpu.memory_space<vmem>>, vector<8x128xf32>
        tpu.vector_store %arg8[%c0_28, %c0_29], %54 {strides = array<i32>} : memref<8x128xf32, #tpu.memory_space<vmem>>, vector<8x128xf32>,
        %c0_30 = arith.constant 0 : index
        %c0_31 = arith.constant 0 : index
        %56 = vector.load %arg7[%c0_30, %c0_31] : memref<8x128xf32, #tpu.memory_space<vmem>>, vector<8x128xf32>
        tpu.vector_store %arg7[%c0_30, %c0_31], %40 {strides = array<i32>} : memref<8x128xf32, #tpu.memory_space<vmem>>, vector<8x128xf32>,
      } else {
      }
    } else {
    }
    %c0_i32_10 = arith.constant 0 : i32
    %19 = arith.cmpi eq, %arg1, %c0_i32_10 : i32
    %20 = arith.extui %19 : i1 to i32
    %c0_i32_11 = arith.constant 0 : i32
    %21 = arith.cmpi ne, %20, %c0_i32_11 : i32
    scf.if %21 {
      %c0 = arith.constant 0 : index
      %c0_12 = arith.constant 0 : index
      %22 = vector.load %arg5[%c0, %c0_12] : memref<8x128xf32, #tpu.memory_space<vmem>>, vector<8x128xf32>
      %c0_13 = arith.constant 0 : index
      %c0_14 = arith.constant 0 : index
      %c0_15 = arith.constant 0 : index
      %c0_16 = arith.constant 0 : index
      %23 = vector.load %arg4[%c0_13, %c0_14, %c0_15, %c0_16] : memref<1x4x8x128xf32, #tpu.memory_space<vmem>>, vector<1x1x8x128xf32>
      %24 = vector.shape_cast %23 : vector<1x1x8x128xf32> to vector<8x128xf32>
      %25 = vector.shape_cast %22 : vector<8x128xf32> to vector<1x1x8x128xf32>
      tpu.vector_store %arg4[%c0_13, %c0_14, %c0_15, %c0_16], %25 {strides = array<i32>} : memref<1x4x8x128xf32, #tpu.memory_space<vmem>>, vector<1x1x8x128xf32>,
      %c0_17 = arith.constant 0 : index
      %c0_18 = arith.constant 0 : index
      %26 = vector.load %arg6[%c0_17, %c0_18] : memref<8x128xf32, #tpu.memory_space<vmem>>, vector<8x128xf32>
      %c0_19 = arith.constant 0 : index
      %c1 = arith.constant 1 : index
      %c0_20 = arith.constant 0 : index
      %c0_21 = arith.constant 0 : index
      %27 = vector.load %arg4[%c0_19, %c1, %c0_20, %c0_21] : memref<1x4x8x128xf32, #tpu.memory_space<vmem>>, vector<1x1x8x128xf32>
      %28 = vector.shape_cast %27 : vector<1x1x8x128xf32> to vector<8x128xf32>
      %29 = vector.shape_cast %26 : vector<8x128xf32> to vector<1x1x8x128xf32>
      tpu.vector_store %arg4[%c0_19, %c1, %c0_20, %c0_21], %29 {strides = array<i32>} : memref<1x4x8x128xf32, #tpu.memory_space<vmem>>, vector<1x1x8x128xf32>,
      %c0_22 = arith.constant 0 : index
      %c0_23 = arith.constant 0 : index
      %30 = vector.load %arg7[%c0_22, %c0_23] : memref<8x128xf32, #tpu.memory_space<vmem>>, vector<8x128xf32>
      %c0_24 = arith.constant 0 : index
      %c2 = arith.constant 2 : index
      %c0_25 = arith.constant 0 : index
      %c0_26 = arith.constant 0 : index
      %31 = vector.load %arg4[%c0_24, %c2, %c0_25, %c0_26] : memref<1x4x8x128xf32, #tpu.memory_space<vmem>>, vector<1x1x8x128xf32>
      %32 = vector.shape_cast %31 : vector<1x1x8x128xf32> to vector<8x128xf32>
      %33 = vector.shape_cast %30 : vector<8x128xf32> to vector<1x1x8x128xf32>
      tpu.vector_store %arg4[%c0_24, %c2, %c0_25, %c0_26], %33 {strides = array<i32>} : memref<1x4x8x128xf32, #tpu.memory_space<vmem>>, vector<1x1x8x128xf32>,
      %c0_27 = arith.constant 0 : index
      %c0_28 = arith.constant 0 : index
      %34 = vector.load %arg8[%c0_27, %c0_28] : memref<8x128xf32, #tpu.memory_space<vmem>>, vector<8x128xf32>
      %c0_29 = arith.constant 0 : index
      %c3 = arith.constant 3 : index
      %c0_30 = arith.constant 0 : index
      %c0_31 = arith.constant 0 : index
      %35 = vector.load %arg4[%c0_29, %c3, %c0_30, %c0_31] : memref<1x4x8x128xf32, #tpu.memory_space<vmem>>, vector<1x1x8x128xf32>
      %36 = vector.shape_cast %35 : vector<1x1x8x128xf32> to vector<8x128xf32>
      %37 = vector.shape_cast %34 : vector<8x128xf32> to vector<1x1x8x128xf32>
      tpu.vector_store %arg4[%c0_29, %c3, %c0_30, %c0_31], %37 {strides = array<i32>} : memref<1x4x8x128xf32, #tpu.memory_space<vmem>>, vector<1x1x8x128xf32>,
    } else {
    }
    return
  }
  func.func @transform_0(%arg0: i32, %arg1: i32) -> (i32, i32) {
    %c1_i32 = arith.constant 1 : i32
    %0 = arith.muli %arg0, %c1_i32 : i32
    %1 = arith.addi %0, %arg1 : i32
    %c0_i32 = arith.constant 0 : i32
    %2 = arith.minsi %1, %c0_i32 : i32
    %c0_i32_0 = arith.constant 0 : i32
    %c0_i32_1 = arith.constant 0 : i32
    return %2, %c0_i32_0 : i32, i32
  }
  func.func @transform_1(%arg0: i32, %arg1: i32) -> (i32, i32) {
    %c1_i32 = arith.constant 1 : i32
    %0 = arith.muli %arg0, %c1_i32 : i32
    %1 = arith.addi %0, %arg1 : i32
    %c0_i32 = arith.constant 0 : i32
    %2 = arith.minsi %1, %c0_i32 : i32
    %c0_i32_0 = arith.constant 0 : i32
    %c0_i32_1 = arith.constant 0 : i32
    return %2, %c0_i32_0 : i32, i32
  }
  func.func @transform_2(%arg0: i32, %arg1: i32) -> (i32, i32, i32, i32) {
    %c0_i32 = arith.constant 0 : i32
    %c0_i32_0 = arith.constant 0 : i32
    %c0_i32_1 = arith.constant 0 : i32
    %c0_i32_2 = arith.constant 0 : i32
    return %arg0, %c0_i32, %c0_i32_0, %c0_i32_1 : i32, i32, i32, i32
  }
}

</mosaic_0001>

<bundles_post_ra>
// kernel: tpu_custom_call.1
= control target key start
LH: loop header
LB: loop body
LE: loop exit
PB: predicated region body
PF: predicated region fallthrough
CT: control target
= control target key end

     0   :  { %7 = vsyncpa [#allocation7], 0  ;;  %s319_s0 = inlined_call_operand.hbm [shape: f32[8,128], index: 0, kind: input, shape index: {}]   ;;  %s320_s1 = inlined_call_operand.hbm [shape: f32[8,128], index: 1, kind: input, shape index: {}]   ;;  %s321_s2 = inlined_call_operand.hbm [shape: f32[1,4,8,128], index: 2, kind: output, shape index: {}]  }
   0x1   :  { %8 = vsyncpa [#allocation10], 0 }
   0x2   :  { %9 = vsyncpa [#allocation8], 0  ;;  %s290_s9 = smov [#allocation6]   ;;  %s291_s11 = smov [#allocation9]  }
   0x3   :  { %s21_s10 = sshll.u32 %s290_s9, 4  ;;  %s36_s12 = sshll.u32 %s291_s11, 4  ;;  %s22_s10 = int_to_ptr.vmem [resolvable:$true] %s21_s10  ;;  %s37_s12 = int_to_ptr.vmem [resolvable:$true] %s36_s12 }
   0x4   :  { %s232_s13 = scalar_lea.vmem %s22_s10, 128  ;;  %p237_p1 = scmp.lt.s32.totalorder %s22_s10, %s22_s10 }
   0x5   :  { %p233_p0 = scmp.ne.s32.totalorder %s22_s10, %s232_s13  ;;  %p238_p2 = scmp.lt.s32.totalorder %s232_s13, %s232_s13 }
   0x7   :  { %p239_p3 = por %p238_p2, %p237_p1 }
   0x9   :  { %p240_p4 = pnand %p239_p3, %p233_p0 }
   0xb   :  { %243 = shalt.err (!%p240_p4)
}
   0xc   :  { %24 = dma.hbm_to_vmem [thread:$0]  %s319_s0, 128, %s22_s10, [#allocation7]  }
   0xd   :  { %s252_s16 = scalar_lea.vmem %s37_s12, 128  ;;  %p257_p6 = scmp.lt.s32.totalorder %s37_s12, %s37_s12 }
   0xe   :  { %p253_p5 = scmp.ne.s32.totalorder %s37_s12, %s252_s16  ;;  %p258_p7 = scmp.lt.s32.totalorder %s252_s16, %s252_s16 }
  0x10   :  { %p259_p8 = por %p258_p7, %p257_p6 }
  0x12   :  { %p260_p9 = pnand %p259_p8, %p253_p5 }
  0x14   :  { %263 = shalt.err (!%p260_p9)
}
  0x15   :  { %39 = dma.hbm_to_vmem [thread:$0]  %s320_s1, 128, %s37_s12, [#allocation10]  }
  0x16   :  { %284 = dma.done.wait [#allocation7], 128  }
  0x17   :  { %285 = vsyncadd [#allocation7], 4294967168 }
  0x18   :  { %286 = dma.done.wait [#allocation10], 128  }
  0x19   :  { %287 = vsyncadd [#allocation10], 4294967168  ;;  %v77_v0 = vlaneseq  ;;  %v68_v4 = vld [vmem:[#allocation6] sm:$0xff]  ;;  %v121_v5 = vld [vmem:[#allocation9] sm:$0xff]  ;;  %s292_s0 = smov [#allocation11]  }
  0x1a   :  { %v69_v6 = vsub.f32 1.25, %v68_v4  ;;  %v122_v7 = vadd.f32 0.25, %v121_v5  ;;  %v209_v10 = vadd.f32 -0.75, %v68_v4  ;;  %v210_v12 = vadd.f32 -0.25, %v121_v5  ;;  %s192_s1 = sshll.u32 %s292_s0, 4  ;;  %s193_s1 = int_to_ptr.vmem [resolvable:$true] %s192_s1 }
  0x1b   :  { %v78_v1 = vshrl.u32 %v77_v0, 7  ;;  %v80_v2 = vand.u32 127, %v77_v0  ;;  %s264_s19 = scalar_lea.vmem %s193_s1, 512  ;;  %p269_p11 = scmp.lt.s32.totalorder %s193_s1, %s193_s1 }
  0x1c   :  { %v70_v9 = vmax.f32 %v69_v6, 0.0  ;;  %v123_v11 = vmax.f32 %v122_v7, 0.0  ;;  %p265_p10 = scmp.ne.s32.totalorder %s193_s1, %s264_s19  ;;  %p270_p12 = scmp.lt.s32.totalorder %s264_s19, %s264_s19 }
  0x1d   :  { %v81_v3 = vmul.u32 128, %v78_v1 }
  0x1e   :  { %v71_v13 = vmul.f32 -64.0, %v70_v9  ;;  %v124_v14 = vmul.f32 64.0, %v123_v11  ;;  %p271_p13 = por %p270_p12, %p269_p11 }
  0x1f   :  { %v82_v8 = vadd.s32 %v81_v3, %v80_v2 }
  0x20   :  { %v73_v15 = vmul.f32 %v209_v10, %v71_v13  ;;  %v126_v16 = vmul.f32 %v210_v12, %v124_v14  ;;  %p272_p0 = pnand %p271_p13, %p265_p10 }
  0x21   :  { %vm83_vm0 = vcmp.lt.s32.totalorder %v82_v8, 128  ;;  %vm136_vm1 = vcmp.lt.s32.totalorder %v82_v8, 256 }
  0x22   :  { %v84_v17 = vsel %vm83_vm0, %v73_v15, -inf  ;;  %v137_v18 = vsel %vm136_vm1, %v126_v16, -inf }
  0x23   :  { %vm87_vm2 = vcmp.eq.f32.partialorder %v84_v17, -inf  ;;  %177 = vst [vmem:[#allocation11] sm:$0xff] %v84_v17  ;;  %vm140_vm3 = vcmp.eq.f32.partialorder %v137_v18, -inf  ;;  %183 = vst [vmem:[#allocation11 + $0x10] sm:$0xff] %v137_v18 }
  0x24   :  { %v88_v19 = vsel %vm87_vm2, 0.0, %v84_v17  ;;  %v141_v20 = vsel %vm140_vm3, 0.0, %v137_v18 }
  0x25   :  { %v92_v21 = vsub.f32 %v84_v17, %v88_v19  ;;  %v89_v22 = vsub.f32 -inf, %v88_v19  ;;  %v145_v23 = vsub.f32 %v137_v18, %v141_v20  ;;  %v142_v24 = vsub.f32 -inf, %v141_v20 }
  0x27   :  { %v93_v25 = vmul.f32 1.442695, %v92_v21  ;;  %v90_v26 = vmul.f32 1.442695, %v89_v22  ;;  %v146_v27 = vmul.f32 1.442695, %v145_v23 }
  0x28   :  { %v143_v28 = vmul.f32 1.442695, %v142_v24 }
  0x29   :  { %216 = vpow2.f32 %v93_v25 }
  0x2a   :  { %218 = vpow2.f32 %v90_v26 }
  0x2b   :  { %220 = vpow2.f32 %v146_v27 }
  0x2c   :  { %222 = vpow2.f32 %v143_v28 }
  0x36   :  { %v217_v29 = vpop.eup %216 }
  0x37   :  { %v219_v30 = vpop.eup %218 }
  0x38   :  { %v221_v31 = vpop.eup %220  ;;  %v97_v32 = vmul.f32 0.0, %v219_v30 }
  0x39   :  { %v223_v33 = vpop.eup %222 }
  0x3a   :  { %v98_v34 = vadd.f32 %v217_v29, %v97_v32  ;;  %v150_v35 = vmul.f32 0.0, %v223_v33 }
  0x3c   :  { %180 = vst [vmem:[#allocation11 + $0x8] sm:$0xff] %v98_v34  ;;  %v151_v36 = vadd.f32 %v221_v31, %v150_v35 }
  0x3e   :  { %186 = vst [vmem:[#allocation11 + $0x18] sm:$0xff] %v151_v36 }
  0x3f   :  { %275 = shalt.err (!%p272_p0)
}
  0x40   :  { %s293_s20 = smov 128   ;;  %s294_s21 = smov 8  }
  0x41   :  { %198 = dma.vmem_to_hbm [thread:$0]  %s193_s1, 512, %s321_s2, [#allocation8], %s293_s20, %s293_s20, %s294_s21  }
  0x42   :  { %288 = dma.done.wait [#allocation8], 512  }
  0x43   :  { %289 = vsyncadd [#allocation8], 4294966784 }
  0x44   :  { %202 = vsyncpa [#allocation7], 1 }
  0x45   :  { %203 = vsyncpa [#allocation10], 1 }
  0x46   :  { %204 = vsyncpa [#allocation8], 1 }

</bundles_post_ra>
